<compile_context>
chip_gen: v6e
topology: v6e:2x2x1
jax: 0.10.0
libtpu: 0.0.40
codegen_flags: <defaults>
</compile_context>

<pallas_src>
import functools
import math

import jax
import jax.numpy as jnp
from jax.experimental import pallas as pl
from jax.experimental.pallas import tpu as pltpu

EPS = 1e-6
NEG_INF = -1e9


def _layernorm(x, a, b, eps=EPS):
    # PyTorch module's LayerNorm: unbiased std (divide by N-1), eps added to std.
    d = x.shape[-1]
    mean = jnp.mean(x, axis=-1, keepdims=True)
    c = x - mean
    var = jnp.sum(c * c, axis=-1, keepdims=True) * (1.0 / (d - 1))
    inv = pl.reciprocal(jnp.sqrt(var) + eps, approx=True)   # EUP, frees VALU
    return a * c * inv + b


def encoder_layer_kernel(xq_ref, xkv_ref, mask_ref,
                         ln1a_ref, ln1b_ref,
                         wqkv_ref, bqkv_ref, wo_ref, bo_ref,
                         ln2a_ref, ln2b_ref,
                         w1_ref, b1_ref, w2_ref, b2_ref,
                         o_ref, *, num_heads):
    xq = xq_ref[0]        # (TS, D) query tile (residual / LN2 / FFN path)
    xkv = xkv_ref[0]      # (S,  D) full sequence (K / V path)
    mask = mask_ref[0]    # (TS, S)

    ts, d_model = xq.shape
    s_full = xkv.shape[0]
    d_k = d_model // num_heads
    scale = 1.0 / math.sqrt(d_k)
    bf16 = jnp.bfloat16

    # Hoisted additive mask bias: one (TS, S) select shared by all heads.
    mask_bias = jnp.where(mask < 0.5, NEG_INF, 0.0).astype(jnp.float32)

    # ---------------- sublayer 0: x + self_attn(LN1(x)) ----------------
    xn_kv = _layernorm(xkv, ln1a_ref[...], ln1b_ref[...])
    xn_kv_b = xn_kv.astype(bf16)
    bqkv = bqkv_ref[...]
    if ts == s_full:
        # Single fused (S, D) @ (D, 3D) MXU matmul for Q, K, V.
        qkv = jnp.dot(xn_kv_b, wqkv_ref[...],
                      preferred_element_type=jnp.float32) + bqkv
        q = qkv[:, :d_model]
        k = qkv[:, d_model:2 * d_model]
        v = qkv[:, 2 * d_model:]
    else:
        # Sequence-tiled path: Q from the query tile, fused KV from the full seq.
        xn_q = _layernorm(xq, ln1a_ref[...], ln1b_ref[...]).astype(bf16)
        q = jnp.dot(xn_q, wqkv_ref[:, :d_model],
                    preferred_element_type=jnp.float32) + bqkv[:, :d_model]
        kv = jnp.dot(xn_kv_b, wqkv_ref[:, d_model:],
                     preferred_element_type=jnp.float32) + bqkv[:, d_model:]
        k = kv[:, :d_model]
        v = kv[:, d_model:]

    # Batched attention over a head axis (no static Python unroll of heads).
    q3 = jnp.swapaxes(q.reshape(ts, num_heads, d_k), 0, 1).astype(bf16)       # (H,TS,dk)
    k3 = jnp.swapaxes(k.reshape(s_full, num_heads, d_k), 0, 1).astype(bf16)   # (H,S,dk)
    v3 = jnp.swapaxes(v.reshape(s_full, num_heads, d_k), 0, 1).astype(bf16)   # (H,S,dk)

    scores = jnp.einsum("hqd,hkd->hqk", q3, k3,
                        preferred_element_type=jnp.float32) * scale
    scores = scores + mask_bias[None, :, :]
    # TODO(synk): fully-masked rows softmax over (scores - 1e9) instead of being
    # exactly uniform; identical to the reference whenever >=1 key is valid.
    scores = scores - jnp.max(scores, axis=-1, keepdims=True)
    p = jnp.exp(scores)
    p = p * pl.reciprocal(jnp.sum(p, axis=-1, keepdims=True), approx=True)

    ctx = jnp.einsum("hqk,hkd->hqd", p.astype(bf16), v3,
                     preferred_element_type=jnp.float32)            # (H, TS, dk)
    ctx = jnp.swapaxes(ctx, 0, 1).reshape(ts, d_model)              # (TS, D)

    # Single full-K output projection (instead of per-head K=d_k matmuls).
    attn = jnp.dot(ctx.astype(bf16), wo_ref[...],
                   preferred_element_type=jnp.float32) + bo_ref[...]
    x1 = xq + attn

    # ---------------- sublayer 1: x1 + feed_forward(LN2(x1)) ----------------
    xn2 = _layernorm(x1, ln2a_ref[...], ln2b_ref[...]).astype(bf16)
    hmid = jnp.maximum(
        jnp.dot(xn2, w1_ref[...], preferred_element_type=jnp.float32) + b1_ref[...],
        0.0)
    ff = jnp.dot(hmid.astype(bf16), w2_ref[...],
                 preferred_element_type=jnp.float32) + b2_ref[...]
    # TODO(synk): dropout is the identity in eval/inference mode, so it is omitted.
    o_ref[0] = (x1 + ff).astype(o_ref.dtype)


def encoder_layer(x, mask, params, *, num_heads, block_q=128):
    B, S, D = x.shape
    d_ff = params["w1"].shape[-1]
    # Query-tile size: multiple of 8 that divides S; degenerate to full S otherwise.
    ts = block_q if (S > block_q and S % block_q == 0) else S
    n_q = S // ts

    bf16 = jnp.bfloat16
    # Fuse Q/K/V projections into one (D, 3D) weight; bf16 weights for MXU rate
    # and half the weight DMA / VMEM footprint. Biases / LN params stay f32.
    wqkv = jnp.concatenate(
        [params["wq"], params["wk"], params["wv"]], axis=1).astype(bf16)
    bqkv = jnp.concatenate(
        [params["bq"], params["bk"], params["bv"]], axis=1).astype(jnp.float32)
    wo = params["wo"].astype(bf16)
    w1 = params["w1"].astype(bf16)
    w2 = params["w2"].astype(bf16)

    kernel = functools.partial(encoder_layer_kernel, num_heads=num_heads)

    def invariant(shape):
        zeros = (0,) * len(shape)
        return pl.BlockSpec(shape, lambda b, qi: zeros)

    in_specs = [
        pl.BlockSpec((1, ts, D), lambda b, qi: (b, qi, 0)),   # x (query tile)
        pl.BlockSpec((1, S, D), lambda b, qi: (b, 0, 0)),     # x (full seq, K/V)
        pl.BlockSpec((1, ts, S), lambda b, qi: (b, qi, 0)),   # mask tile
        invariant((1, D)), invariant((1, D)),                 # ln1 a / b
        invariant((D, 3 * D)), invariant((1, 3 * D)),         # Wqkv, bqkv
        invariant((D, D)), invariant((1, D)),                 # Wo, bo
        invariant((1, D)), invariant((1, D)),                 # ln2 a / b
        invariant((D, d_ff)), invariant((1, d_ff)),           # W1, b1
        invariant((d_ff, D)), invariant((1, D)),              # W2, b2
    ]

    return pl.pallas_call(
        kernel,
        out_shape=jax.ShapeDtypeStruct((B, S, D), x.dtype),
        grid_spec=pltpu.PrefetchScalarGridSpec(
            num_scalar_prefetch=0,
            grid=(B, n_q),
            in_specs=in_specs,
            out_specs=pl.BlockSpec((1, ts, D), lambda b, qi: (b, qi, 0)),
        ),
        compiler_params=pltpu.CompilerParams(
            dimension_semantics=("parallel", "parallel"),
            # Raise toward physical VMEM (128 MiB v5e/v6e, 64 MiB v7x) for large
            # D/d_ff; 32 MiB is plenty for this config and safe on all targets.
            vmem_limit_bytes=32 * 1024 * 1024,
        ),
    )(x, x, mask,
      params["ln1_a"], params["ln1_b"],
      wqkv, bqkv, wo, params["bo"],
      params["ln2_a"], params["ln2_b"],
      w1, params["b1"], w2, params["b2"])


def reference(x, mask, params, *, num_heads):
    """Pure-JAX f32 reference mirroring the PyTorch forward (eval mode)."""
    B, S, D = x.shape
    d_k = D // num_heads

    def ln(y, a, b):
        mean = y.mean(-1, keepdims=True)
        var = ((y - mean) ** 2).sum(-1, keepdims=True) / (D - 1)
        return a * (y - mean) / (jnp.sqrt(var) + EPS) + b

    xn = ln(x, params["ln1_a"], params["ln1_b"])
    q = xn @ params["wq"] + params["bq"]
    k = xn @ params["wk"] + params["bk"]
    v = xn @ params["wv"] + params["bv"]
    attn_out = jnp.zeros_like(x)
    for h in range(num_heads):
        sl = slice(h * d_k, (h + 1) * d_k)
        scores = jnp.einsum("bqd,bkd->bqk", q[..., sl], k[..., sl]) / jnp.sqrt(
            jnp.float32(d_k))
        scores = jnp.where(mask == 0.0, NEG_INF, scores)
        p = jax.nn.softmax(scores, axis=-1)
        ctx = jnp.einsum("bqk,bkd->bqd", p, v[..., sl])
        attn_out = attn_out + ctx @ params["wo"][sl, :]
    x1 = x + attn_out + params["bo"]
    xn2 = ln(x1, params["ln2_a"], params["ln2_b"])
    ff = jnp.maximum(xn2 @ params["w1"] + params["b1"], 0.0) @ params["w2"] + params["b2"]
    return x1 + ff


def make_params(key, d_model, d_ff):
    ks = jax.random.split(key, 8)
    n = lambda k, shape: (0.1 * jax.random.normal(k, shape)).astype(jnp.float32)
    return {
        "ln1_a": jnp.ones((1, d_model), jnp.float32),
        "ln1_b": jnp.zeros((1, d_model), jnp.float32),
        "wq": n(ks[0], (d_model, d_model)), "bq": n(ks[1], (1, d_model)),
        "wk": n(ks[2], (d_model, d_model)), "bk": jnp.zeros((1, d_model), jnp.float32),
        "wv": n(ks[3], (d_model, d_model)), "bv": jnp.zeros((1, d_model), jnp.float32),
        "wo": n(ks[4], (d_model, d_model)), "bo": jnp.zeros((1, d_model), jnp.float32),
        "ln2_a": jnp.ones((1, d_model), jnp.float32),
        "ln2_b": jnp.zeros((1, d_model), jnp.float32),
        "w1": n(ks[5], (d_model, d_ff)), "b1": n(ks[6], (1, d_ff)),
        "w2": n(ks[7], (d_ff, d_model)), "b2": jnp.zeros((1, d_model), jnp.float32),
    }


if __name__ == "__main__":
    B, S, D, H, D_FF = 2, 8, 32, 4, 64
    key = jax.random.PRNGKey(0)
    kx, kp = jax.random.split(key)
    x = jax.random.normal(kx, (B, S, D), dtype=jnp.float32)
    # padding mask: batch 1 masks out the last two key positions
    mask = jnp.ones((B, S, S), dtype=jnp.float32).at[1, :, 6:].set(0.0)
    params = make_params(kp, D, D_FF)

    out = encoder_layer(x, mask, params, num_heads=H)
    out = jax.block_until_ready(out)

    ref = reference(x, mask, params, num_heads=H)
    assert out.shape == (B, S, D)
    # bf16 matmul operands + approx reciprocals -> looser tolerance than pure f32.
    assert jnp.allclose(out, ref, atol=5e-2, rtol=5e-2), "mismatch vs reference"
    print("KERNEL_OK")
</pallas_src>

<mosaic_0001>
module attributes {stable_mosaic.version = 11 : i64} {
  func.func @encoder_layer_kernel(%arg0: i32, %arg1: i32, %arg2: memref<1x8x32xf32, #tpu.memory_space<vmem>>, %arg3: memref<1x8x32xf32, #tpu.memory_space<vmem>>, %arg4: memref<1x8x8xf32, #tpu.memory_space<vmem>>, %arg5: memref<1x32xf32, #tpu.memory_space<vmem>>, %arg6: memref<1x32xf32, #tpu.memory_space<vmem>>, %arg7: memref<32x96xbf16, #tpu.memory_space<vmem>>, %arg8: memref<1x96xf32, #tpu.memory_space<vmem>>, %arg9: memref<32x32xbf16, #tpu.memory_space<vmem>>, %arg10: memref<1x32xf32, #tpu.memory_space<vmem>>, %arg11: memref<1x32xf32, #tpu.memory_space<vmem>>, %arg12: memref<1x32xf32, #tpu.memory_space<vmem>>, %arg13: memref<32x64xbf16, #tpu.memory_space<vmem>>, %arg14: memref<1x64xf32, #tpu.memory_space<vmem>>, %arg15: memref<64x32xbf16, #tpu.memory_space<vmem>>, %arg16: memref<1x32xf32, #tpu.memory_space<vmem>>, %arg17: memref<1x8x32xf32, #tpu.memory_space<vmem>>) attributes {dimension_semantics = [#tpu.dimension_semantics<parallel>, #tpu.dimension_semantics<parallel>], iteration_bounds = array<i64: 2, 1>, scalar_prefetch = 0 : i64, scratch_operands = 0 : i64, tpu.core_type = #tpu.core_type<tc>, window_params = [{transform_indices = @transform_0, window_bounds = array<i64: 1, 8, 32>}, {transform_indices = @transform_1, window_bounds = array<i64: 1, 8, 32>}, {transform_indices = @transform_2, window_bounds = array<i64: 1, 8, 8>}, {pipeline_mode = #tpu.pipeline_mode<synchronous>, transform_indices = @transform_3, window_bounds = array<i64: 1, 32>}, {pipeline_mode = #tpu.pipeline_mode<synchronous>, transform_indices = @transform_4, window_bounds = array<i64: 1, 32>}, {pipeline_mode = #tpu.pipeline_mode<synchronous>, transform_indices = @transform_5, window_bounds = array<i64: 32, 96>}, {pipeline_mode = #tpu.pipeline_mode<synchronous>, transform_indices = @transform_6, window_bounds = array<i64: 1, 96>}, {pipeline_mode = #tpu.pipeline_mode<synchronous>, transform_indices = @transform_7, window_bounds = array<i64: 32, 32>}, {pipeline_mode = #tpu.pipeline_mode<synchronous>, transform_indices = @transform_8, window_bounds = array<i64: 1, 32>}, {pipeline_mode = #tpu.pipeline_mode<synchronous>, transform_indices = @transform_9, window_bounds = array<i64: 1, 32>}, {pipeline_mode = #tpu.pipeline_mode<synchronous>, transform_indices = @transform_10, window_bounds = array<i64: 1, 32>}, {pipeline_mode = #tpu.pipeline_mode<synchronous>, transform_indices = @transform_11, window_bounds = array<i64: 32, 64>}, {pipeline_mode = #tpu.pipeline_mode<synchronous>, transform_indices = @transform_12, window_bounds = array<i64: 1, 64>}, {pipeline_mode = #tpu.pipeline_mode<synchronous>, transform_indices = @transform_13, window_bounds = array<i64: 64, 32>}, {pipeline_mode = #tpu.pipeline_mode<synchronous>, transform_indices = @transform_14, window_bounds = array<i64: 1, 32>}, {transform_indices = @transform_15, window_bounds = array<i64: 1, 8, 32>}]} {
    %c0 = arith.constant 0 : index
    %c0_0 = arith.constant 0 : index
    %c0_1 = arith.constant 0 : index
    %0 = vector.load %arg2[%c0, %c0_0, %c0_1] : memref<1x8x32xf32, #tpu.memory_space<vmem>>, vector<1x8x32xf32>
    %1 = vector.shape_cast %0 : vector<1x8x32xf32> to vector<8x32xf32>
    %c0_2 = arith.constant 0 : index
    %c0_3 = arith.constant 0 : index
    %c0_4 = arith.constant 0 : index
    %2 = vector.load %arg3[%c0_2, %c0_3, %c0_4] : memref<1x8x32xf32, #tpu.memory_space<vmem>>, vector<1x8x32xf32>
    %3 = vector.shape_cast %2 : vector<1x8x32xf32> to vector<8x32xf32>
    %c0_5 = arith.constant 0 : index
    %c0_6 = arith.constant 0 : index
    %c0_7 = arith.constant 0 : index
    %4 = vector.load %arg4[%c0_5, %c0_6, %c0_7] : memref<1x8x8xf32, #tpu.memory_space<vmem>>, vector<1x8x8xf32>
    %5 = vector.shape_cast %4 : vector<1x8x8xf32> to vector<8x8xf32>
    %cst = arith.constant 5.000000e-01 : f32
    %6 = vector.broadcast %cst : f32 to vector<8x8xf32>
    %7 = arith.cmpf olt, %5, %6 : vector<8x8xf32>
    %cst_8 = arith.constant -1.000000e+09 : f32
    %cst_9 = arith.constant 0.000000e+00 : f32
    %8 = vector.broadcast %cst_8 : f32 to vector<8x8xf32>
    %9 = vector.broadcast %cst_9 : f32 to vector<8x8xf32>
    %10 = arith.select %7, %8, %9 : vector<8x8xi1>, vector<8x8xf32>
    %c0_10 = arith.constant 0 : index
    %c0_11 = arith.constant 0 : index
    %11 = vector.load %arg5[%c0_10, %c0_11] : memref<1x32xf32, #tpu.memory_space<vmem>>, vector<1x32xf32>
    %c0_12 = arith.constant 0 : index
    %c0_13 = arith.constant 0 : index
    %12 = vector.load %arg6[%c0_12, %c0_13] : memref<1x32xf32, #tpu.memory_space<vmem>>, vector<1x32xf32>
    %cst_14 = arith.constant dense<0.000000e+00> : vector<8xf32>
    %13 = vector.multi_reduction <add>, %3, %cst_14 [1] : vector<8x32xf32> to vector<8xf32>
    %14 = vector.shape_cast %13 : vector<8xf32> to vector<8x1xf32>
    %cst_15 = arith.constant 3.200000e+01 : f32
    %15 = vector.broadcast %cst_15 : f32 to vector<8x1xf32>
    %16 = arith.divf %14, %15 : vector<8x1xf32>
    %17 = vector.broadcast %16 : vector<8x1xf32> to vector<8x32xf32>
    %18 = arith.subf %3, %17 : vector<8x32xf32>
    %19 = arith.mulf %18, %18 : vector<8x32xf32>
    %cst_16 = arith.constant dense<0.000000e+00> : vector<8xf32>
    %20 = vector.multi_reduction <add>, %19, %cst_16 [1] : vector<8x32xf32> to vector<8xf32>
    %21 = vector.shape_cast %20 : vector<8xf32> to vector<8x1xf32>
    %cst_17 = arith.constant 0.0322580636 : f32
    %22 = vector.broadcast %cst_17 : f32 to vector<8x1xf32>
    %23 = arith.mulf %21, %22 : vector<8x1xf32>
    %24 = math.sqrt %23 : vector<8x1xf32>
    %cst_18 = arith.constant 9.99999997E-7 : f32
    %25 = vector.broadcast %cst_18 : f32 to vector<8x1xf32>
    %26 = arith.addf %24, %25 : vector<8x1xf32>
    %27 = tpu.reciprocal %26 {approx = true} : vector<8x1xf32> -> vector<8x1xf32>
    %28 = vector.broadcast %11 : vector<1x32xf32> to vector<8x32xf32>
    %29 = arith.mulf %28, %18 : vector<8x32xf32>
    %30 = vector.broadcast %27 : vector<8x1xf32> to vector<8x32xf32>
    %31 = arith.mulf %29, %30 : vector<8x32xf32>
    %32 = vector.broadcast %12 : vector<1x32xf32> to vector<8x32xf32>
    %33 = arith.addf %31, %32 : vector<8x32xf32>
    %34 = arith.truncf %33 : vector<8x32xf32> to vector<8x32xbf16>
    %c0_19 = arith.constant 0 : index
    %c0_20 = arith.constant 0 : index
    %35 = vector.load %arg8[%c0_19, %c0_20] : memref<1x96xf32, #tpu.memory_space<vmem>>, vector<1x96xf32>
    %c0_21 = arith.constant 0 : index
    %c0_22 = arith.constant 0 : index
    %36 = vector.load %arg7[%c0_21, %c0_22] : memref<32x96xbf16, #tpu.memory_space<vmem>>, vector<32x96xbf16>
    %cst_23 = arith.constant dense<0.000000e+00> : vector<8x96xf32>
    %37 = tpu.matmul %34, %36, %cst_23 {dimension_numbers = #tpu.dot_dimension_numbers<[1], [0], [0], [1], [0, 0, 1, 1], [], []>} : vector<8x32xbf16>, vector<32x96xbf16>, vector<8x96xf32> -> vector<8x96xf32>
    %38 = vector.broadcast %35 : vector<1x96xf32> to vector<8x96xf32>
    %39 = arith.addf %37, %38 : vector<8x96xf32>
    %40 = vector.extract_strided_slice %39 {offsets = [0, 0], sizes = [8, 32], strides = [1, 1]} : vector<8x96xf32> to vector<8x32xf32>
    %41 = vector.extract_strided_slice %39 {offsets = [0, 32], sizes = [8, 32], strides = [1, 1]} : vector<8x96xf32> to vector<8x32xf32>
    %42 = vector.extract_strided_slice %39 {offsets = [0, 64], sizes = [8, 32], strides = [1, 1]} : vector<8x96xf32> to vector<8x32xf32>
    %43 = vector.shape_cast %40 : vector<8x32xf32> to vector<8x4x8xf32>
    %44 = tpu.transpose %43, [1, 0, 2] : vector<8x4x8xf32> -> vector<4x8x8xf32>
    %45 = arith.truncf %44 : vector<4x8x8xf32> to vector<4x8x8xbf16>
    %46 = vector.shape_cast %41 : vector<8x32xf32> to vector<8x4x8xf32>
    %47 = tpu.transpose %46, [1, 0, 2] : vector<8x4x8xf32> -> vector<4x8x8xf32>
    %48 = arith.truncf %47 : vector<4x8x8xf32> to vector<4x8x8xbf16>
    %49 = vector.shape_cast %42 : vector<8x32xf32> to vector<8x4x8xf32>
    %50 = tpu.transpose %49, [1, 0, 2] : vector<8x4x8xf32> -> vector<4x8x8xf32>
    %51 = arith.truncf %50 : vector<4x8x8xf32> to vector<4x8x8xbf16>
    "tpu.trace_start"() <{level = 10 : i32, message = "hqd,hkd->hqk"}> : () -> ()
    %cst_24 = arith.constant dense<0.000000e+00> : vector<4x8x8xf32>
    %52 = tpu.matmul %45, %48, %cst_24 {dimension_numbers = #tpu.dot_dimension_numbers<[2], [2], [1], [1], [0, 0, 0, 1, 1, 1], [0], [0]>} : vector<4x8x8xbf16>, vector<4x8x8xbf16>, vector<4x8x8xf32> -> vector<4x8x8xf32>
    "tpu.trace_stop"() : () -> ()
    %cst_25 = arith.constant 0.353553385 : f32
    %53 = vector.broadcast %cst_25 : f32 to vector<4x8x8xf32>
    %54 = arith.mulf %52, %53 : vector<4x8x8xf32>
    %55 = vector.shape_cast %10 : vector<8x8xf32> to vector<1x8x8xf32>
    %56 = vector.broadcast %55 : vector<1x8x8xf32> to vector<4x8x8xf32>
    %57 = arith.addf %54, %56 : vector<4x8x8xf32>
    %cst_26 = arith.constant dense<0xFF800000> : vector<4x8xf32>
    %58 = vector.multi_reduction <maximumf>, %57, %cst_26 [2] : vector<4x8x8xf32> to vector<4x8xf32>
    %59 = vector.shape_cast %58 : vector<4x8xf32> to vector<4x8x1xf32>
    %60 = vector.broadcast %59 : vector<4x8x1xf32> to vector<4x8x8xf32>
    %61 = arith.subf %57, %60 : vector<4x8x8xf32>
    %62 = math.exp %61 : vector<4x8x8xf32>
    %cst_27 = arith.constant dense<0.000000e+00> : vector<4x8xf32>
    %63 = vector.multi_reduction <add>, %62, %cst_27 [2] : vector<4x8x8xf32> to vector<4x8xf32>
    %64 = vector.shape_cast %63 : vector<4x8xf32> to vector<4x8x1xf32>
    %65 = tpu.reciprocal %64 {approx = true} : vector<4x8x1xf32> -> vector<4x8x1xf32>
    %66 = vector.broadcast %65 : vector<4x8x1xf32> to vector<4x8x8xf32>
    %67 = arith.mulf %62, %66 : vector<4x8x8xf32>
    %68 = arith.truncf %67 : vector<4x8x8xf32> to vector<4x8x8xbf16>
    "tpu.trace_start"() <{level = 10 : i32, message = "hqk,hkd->hqd"}> : () -> ()
    %cst_28 = arith.constant dense<0.000000e+00> : vector<4x8x8xf32>
    %69 = tpu.matmul %68, %51, %cst_28 {dimension_numbers = #tpu.dot_dimension_numbers<[2], [1], [1], [2], [0, 0, 0, 1, 1, 2], [0], [0]>} : vector<4x8x8xbf16>, vector<4x8x8xbf16>, vector<4x8x8xf32> -> vector<4x8x8xf32>
    "tpu.trace_stop"() : () -> ()
    %70 = tpu.transpose %69, [1, 0, 2] : vector<4x8x8xf32> -> vector<8x4x8xf32>
    %71 = vector.shape_cast %70 : vector<8x4x8xf32> to vector<8x32xf32>
    %72 = arith.truncf %71 : vector<8x32xf32> to vector<8x32xbf16>
    %c0_29 = arith.constant 0 : index
    %c0_30 = arith.constant 0 : index
    %73 = vector.load %arg9[%c0_29, %c0_30] : memref<32x32xbf16, #tpu.memory_space<vmem>>, vector<32x32xbf16>
    %cst_31 = arith.constant dense<0.000000e+00> : vector<8x32xf32>
    %74 = tpu.matmul %72, %73, %cst_31 {dimension_numbers = #tpu.dot_dimension_numbers<[1], [0], [0], [1], [0, 0, 1, 1], [], []>} : vector<8x32xbf16>, vector<32x32xbf16>, vector<8x32xf32> -> vector<8x32xf32>
    %c0_32 = arith.constant 0 : index
    %c0_33 = arith.constant 0 : index
    %75 = vector.load %arg10[%c0_32, %c0_33] : memref<1x32xf32, #tpu.memory_space<vmem>>, vector<1x32xf32>
    %76 = vector.broadcast %75 : vector<1x32xf32> to vector<8x32xf32>
    %77 = arith.addf %74, %76 : vector<8x32xf32>
    %78 = arith.addf %1, %77 : vector<8x32xf32>
    %c0_34 = arith.constant 0 : index
    %c0_35 = arith.constant 0 : index
    %79 = vector.load %arg11[%c0_34, %c0_35] : memref<1x32xf32, #tpu.memory_space<vmem>>, vector<1x32xf32>
    %c0_36 = arith.constant 0 : index
    %c0_37 = arith.constant 0 : index
    %80 = vector.load %arg12[%c0_36, %c0_37] : memref<1x32xf32, #tpu.memory_space<vmem>>, vector<1x32xf32>
    %cst_38 = arith.constant dense<0.000000e+00> : vector<8xf32>
    %81 = vector.multi_reduction <add>, %78, %cst_38 [1] : vector<8x32xf32> to vector<8xf32>
    %82 = vector.shape_cast %81 : vector<8xf32> to vector<8x1xf32>
    %cst_39 = arith.constant 3.200000e+01 : f32
    %83 = vector.broadcast %cst_39 : f32 to vector<8x1xf32>
    %84 = arith.divf %82, %83 : vector<8x1xf32>
    %85 = vector.broadcast %84 : vector<8x1xf32> to vector<8x32xf32>
    %86 = arith.subf %78, %85 : vector<8x32xf32>
    %87 = arith.mulf %86, %86 : vector<8x32xf32>
    %cst_40 = arith.constant dense<0.000000e+00> : vector<8xf32>
    %88 = vector.multi_reduction <add>, %87, %cst_40 [1] : vector<8x32xf32> to vector<8xf32>
    %89 = vector.shape_cast %88 : vector<8xf32> to vector<8x1xf32>
    %cst_41 = arith.constant 0.0322580636 : f32
    %90 = vector.broadcast %cst_41 : f32 to vector<8x1xf32>
    %91 = arith.mulf %89, %90 : vector<8x1xf32>
    %92 = math.sqrt %91 : vector<8x1xf32>
    %cst_42 = arith.constant 9.99999997E-7 : f32
    %93 = vector.broadcast %cst_42 : f32 to vector<8x1xf32>
    %94 = arith.addf %92, %93 : vector<8x1xf32>
    %95 = tpu.reciprocal %94 {approx = true} : vector<8x1xf32> -> vector<8x1xf32>
    %96 = vector.broadcast %79 : vector<1x32xf32> to vector<8x32xf32>
    %97 = arith.mulf %96, %86 : vector<8x32xf32>
    %98 = vector.broadcast %95 : vector<8x1xf32> to vector<8x32xf32>
    %99 = arith.mulf %97, %98 : vector<8x32xf32>
    %100 = vector.broadcast %80 : vector<1x32xf32> to vector<8x32xf32>
    %101 = arith.addf %99, %100 : vector<8x32xf32>
    %102 = arith.truncf %101 : vector<8x32xf32> to vector<8x32xbf16>
    %c0_43 = arith.constant 0 : index
    %c0_44 = arith.constant 0 : index
    %103 = vector.load %arg13[%c0_43, %c0_44] : memref<32x64xbf16, #tpu.memory_space<vmem>>, vector<32x64xbf16>
    %cst_45 = arith.constant dense<0.000000e+00> : vector<8x64xf32>
    %104 = tpu.matmul %102, %103, %cst_45 {dimension_numbers = #tpu.dot_dimension_numbers<[1], [0], [0], [1], [0, 0, 1, 1], [], []>} : vector<8x32xbf16>, vector<32x64xbf16>, vector<8x64xf32> -> vector<8x64xf32>
    %c0_46 = arith.constant 0 : index
    %c0_47 = arith.constant 0 : index
    %105 = vector.load %arg14[%c0_46, %c0_47] : memref<1x64xf32, #tpu.memory_space<vmem>>, vector<1x64xf32>
    %106 = vector.broadcast %105 : vector<1x64xf32> to vector<8x64xf32>
    %107 = arith.addf %104, %106 : vector<8x64xf32>
    %cst_48 = arith.constant 0.000000e+00 : f32
    %108 = vector.broadcast %cst_48 : f32 to vector<8x64xf32>
    %109 = arith.maximumf %107, %108 : vector<8x64xf32>
    %110 = arith.truncf %109 : vector<8x64xf32> to vector<8x64xbf16>
    %c0_49 = arith.constant 0 : index
    %c0_50 = arith.constant 0 : index
    %111 = vector.load %arg15[%c0_49, %c0_50] : memref<64x32xbf16, #tpu.memory_space<vmem>>, vector<64x32xbf16>
    %cst_51 = arith.constant dense<0.000000e+00> : vector<8x32xf32>
    %112 = tpu.matmul %110, %111, %cst_51 {dimension_numbers = #tpu.dot_dimension_numbers<[1], [0], [0], [1], [0, 0, 1, 1], [], []>} : vector<8x64xbf16>, vector<64x32xbf16>, vector<8x32xf32> -> vector<8x32xf32>
    %c0_52 = arith.constant 0 : index
    %c0_53 = arith.constant 0 : index
    %113 = vector.load %arg16[%c0_52, %c0_53] : memref<1x32xf32, #tpu.memory_space<vmem>>, vector<1x32xf32>
    %114 = vector.broadcast %113 : vector<1x32xf32> to vector<8x32xf32>
    %115 = arith.addf %112, %114 : vector<8x32xf32>
    %116 = arith.addf %78, %115 : vector<8x32xf32>
    %c0_54 = arith.constant 0 : index
    %c0_55 = arith.constant 0 : index
    %c0_56 = arith.constant 0 : index
    %117 = vector.load %arg17[%c0_54, %c0_55, %c0_56] : memref<1x8x32xf32, #tpu.memory_space<vmem>>, vector<1x8x32xf32>
    %118 = vector.shape_cast %117 : vector<1x8x32xf32> to vector<8x32xf32>
    %119 = vector.shape_cast %116 : vector<8x32xf32> to vector<1x8x32xf32>
    tpu.vector_store %arg17[%c0_54, %c0_55, %c0_56], %119 {strides = array<i32>} : memref<1x8x32xf32, #tpu.memory_space<vmem>>, vector<1x8x32xf32>,
    return
  }
  func.func @transform_0(%arg0: i32, %arg1: i32) -> (i32, i32, i32) {
    %c0_i32 = arith.constant 0 : i32
    %c0_i32_0 = arith.constant 0 : i32
    return %arg0, %arg1, %c0_i32 : i32, i32, i32
  }
  func.func @transform_1(%arg0: i32, %arg1: i32) -> (i32, i32, i32) {
    %c0_i32 = arith.constant 0 : i32
    %c0_i32_0 = arith.constant 0 : i32
    %c0_i32_1 = arith.constant 0 : i32
    return %arg0, %c0_i32, %c0_i32_0 : i32, i32, i32
  }
  func.func @transform_2(%arg0: i32, %arg1: i32) -> (i32, i32, i32) {
    %c0_i32 = arith.constant 0 : i32
    %c0_i32_0 = arith.constant 0 : i32
    return %arg0, %arg1, %c0_i32 : i32, i32, i32
  }
  func.func @transform_3(%arg0: i32, %arg1: i32) -> (i32, i32) {
    %c0_i32 = arith.constant 0 : i32
    %c0_i32_0 = arith.constant 0 : i32
    %c0_i32_1 = arith.constant 0 : i32
    return %c0_i32, %c0_i32_0 : i32, i32
  }
  func.func @transform_4(%arg0: i32, %arg1: i32) -> (i32, i32) {
    %c0_i32 = arith.constant 0 : i32
    %c0_i32_0 = arith.constant 0 : i32
    %c0_i32_1 = arith.constant 0 : i32
    return %c0_i32, %c0_i32_0 : i32, i32
  }
  func.func @transform_5(%arg0: i32, %arg1: i32) -> (i32, i32) {
    %c0_i32 = arith.constant 0 : i32
    %c0_i32_0 = arith.constant 0 : i32
    %c0_i32_1 = arith.constant 0 : i32
    return %c0_i32, %c0_i32_0 : i32, i32
  }
  func.func @transform_6(%arg0: i32, %arg1: i32) -> (i32, i32) {
    %c0_i32 = arith.constant 0 : i32
    %c0_i32_0 = arith.constant 0 : i32
    %c0_i32_1 = arith.constant 0 : i32
    return %c0_i32, %c0_i32_0 : i32, i32
  }
  func.func @transform_7(%arg0: i32, %arg1: i32) -> (i32, i32) {
    %c0_i32 = arith.constant 0 : i32
    %c0_i32_0 = arith.constant 0 : i32
    %c0_i32_1 = arith.constant 0 : i32
    return %c0_i32, %c0_i32_0 : i32, i32
  }
  func.func @transform_8(%arg0: i32, %arg1: i32) -> (i32, i32) {
    %c0_i32 = arith.constant 0 : i32
    %c0_i32_0 = arith.constant 0 : i32
    %c0_i32_1 = arith.constant 0 : i32
    return %c0_i32, %c0_i32_0 : i32, i32
  }
  func.func @transform_9(%arg0: i32, %arg1: i32) -> (i32, i32) {
    %c0_i32 = arith.constant 0 : i32
    %c0_i32_0 = arith.constant 0 : i32
    %c0_i32_1 = arith.constant 0 : i32
    return %c0_i32, %c0_i32_0 : i32, i32
  }
  func.func @transform_10(%arg0: i32, %arg1: i32) -> (i32, i32) {
    %c0_i32 = arith.constant 0 : i32
    %c0_i32_0 = arith.constant 0 : i32
    %c0_i32_1 = arith.constant 0 : i32
    return %c0_i32, %c0_i32_0 : i32, i32
  }
  func.func @transform_11(%arg0: i32, %arg1: i32) -> (i32, i32) {
    %c0_i32 = arith.constant 0 : i32
    %c0_i32_0 = arith.constant 0 : i32
    %c0_i32_1 = arith.constant 0 : i32
    return %c0_i32, %c0_i32_0 : i32, i32
  }
  func.func @transform_12(%arg0: i32, %arg1: i32) -> (i32, i32) {
    %c0_i32 = arith.constant 0 : i32
    %c0_i32_0 = arith.constant 0 : i32
    %c0_i32_1 = arith.constant 0 : i32
    return %c0_i32, %c0_i32_0 : i32, i32
  }
  func.func @transform_13(%arg0: i32, %arg1: i32) -> (i32, i32) {
    %c0_i32 = arith.constant 0 : i32
    %c0_i32_0 = arith.constant 0 : i32
    %c0_i32_1 = arith.constant 0 : i32
    return %c0_i32, %c0_i32_0 : i32, i32
  }
  func.func @transform_14(%arg0: i32, %arg1: i32) -> (i32, i32) {
    %c0_i32 = arith.constant 0 : i32
    %c0_i32_0 = arith.constant 0 : i32
    %c0_i32_1 = arith.constant 0 : i32
    return %c0_i32, %c0_i32_0 : i32, i32
  }
  func.func @transform_15(%arg0: i32, %arg1: i32) -> (i32, i32, i32) {
    %c0_i32 = arith.constant 0 : i32
    %c0_i32_0 = arith.constant 0 : i32
    return %arg0, %arg1, %c0_i32 : i32, i32, i32
  }
}

</mosaic_0001>

<bundles_post_ra>
// kernel: tpu_custom_call.1
= control target key start
LH: loop header
LB: loop body
LE: loop exit
PB: predicated region body
PF: predicated region fallthrough
CT: control target
= control target key end

     0   :  { %20 = vsyncpa [#allocation3], 0  ;;  %s3119_s0 = inlined_call_operand.vmem [shape: f32[2,8,32], index: 0, kind: input, shape index: {}]   ;;  %s3120_s1 = inlined_call_operand.vmem [shape: f32[2,8,32], index: 1, kind: input, shape index: {}]   ;;  %s3121_s2 = inlined_call_operand.vmem [shape: f32[2,8,8], index: 2, kind: input, shape index: {}]   ;;  %s3122_s3 = inlined_call_operand.vmem [shape: f32[1,32], index: 3, kind: input, shape index: {}]   ;;  %s3123_s4 = inlined_call_operand.vmem [shape: f32[1,32], index: 4, kind: input, shape index: {}]   ;;  %s3124_s5 = inlined_call_operand.hbm [shape: bf16[32,96], index: 5, kind: input, shape index: {}]   ;;  %s3125_s6 = inlined_call_operand.vmem [shape: f32[1,96], index: 6, kind: input, shape index: {}]   ;;  %s3126_s7 = inlined_call_operand.hbm [shape: bf16[32,32], index: 7, kind: input, shape index: {}]   ;;  %s3127_s8 = inlined_call_operand.vmem [shape: f32[1,32], index: 8, kind: input, shape index: {}]   ;;  %s3128_s9 = inlined_call_operand.vmem [shape: f32[1,32], index: 9, kind: input, shape index: {}]   ;;  %s3129_s10 = inlined_call_operand.vmem [shape: f32[1,32], index: 10, kind: input, shape index: {}]   ;;  %s3130_s11 = inlined_call_operand.hbm [shape: bf16[32,64], index: 11, kind: input, shape index: {}]   ;;  %s3131_s12 = inlined_call_operand.vmem [shape: f32[1,64], index: 12, kind: input, shape index: {}]   ;;  %s3132_s13 = inlined_call_operand.vmem [shape: bf16[64,32], index: 13, kind: input, shape index: {}]   ;;  %s3133_s14 = inlined_call_operand.vmem [shape: f32[1,32], index: 14, kind: input, shape index: {}]   ;;  %s3134_s15 = inlined_call_operand.hbm [shape: f32[2,8,32], index: 15, kind: output, shape index: {}]  }
   0x1   :  { %21 = vsyncpa [#allocation6], 0 }
   0x2   :  { %22 = vsyncpa [#allocation4], 0 }
   0x3   :  { %24 = vsyncpa [#allocation4 + $0x1], 0  ;;  %s2717_s18 = smov 0   ;;  %s2719_s19 = smov 0  }
   0x4   :  { %s2721_s20 = smov 0   ;;  %s2723_s21 = smov 0  }
   0x5   :  { %s2725_s22 = smov 0   ;;  %s2727_s23 = smov 0  }
   0x6 LB: > { %3142 = sst [smem:[#allocation12_spill]] %s2597_s18  ;;  %s2150_s24 = sadd.s32 4294967295, %s2617_s23   ;;  %s2617_s23 = sphi %s2727_s23, %s30_s23   ;;  %s2613_s22 = sphi %s2725_s22, %s3161_s22   ;;  %s2609_s21 = sphi %s2723_s21, %s3160_s21   ;;  %s2605_s20 = sphi %s2721_s20, %s3159_s20   ;;  %s2601_s19 = sphi %s2719_s19, %s3163_s19   ;;  %s2597_s18 = sphi %s2717_s18, %s3162_s18  }
   0x7   : > { %3143 = sst [smem:[#allocation13_spill]] %s2605_s20  ;;  %s2151_s25 = sadd.s32 4294967294, %s2617_s23  }
   0x8   : > { %3144 = sst [smem:[#allocation14_spill]] %s2613_s22  ;;  %s42_s26 = sadd.s32 1, %s2613_s22 }
   0x9   : > { %3145 = sst [smem:[#allocation15_spill]] %s2617_s23  ;;  %s385_s27 = sadd.s32 1, %s2605_s20 }
   0xa   : > { %p44_p0 = scmp.ge.s32.totalorder %s42_s26, 2  ;;  %p395_p1 = scmp.ne.s32.totalorder %s2605_s20, %s2601_s19 }
   0xb   : > { %p396_p2 = scmp.eq.s32.totalorder %s2150_s24, 1  ;;  %p401_p3 = scmp.ne.s32.totalorder %s2601_s19, %s2597_s18 }
   0xc   : > { %s3165_s26 = smov (%p44_p0, %s42_s26), 0  ;;  %p402_p5 = scmp.eq.s32.totalorder %s2151_s25, 1 }
   0xd   : > { %3146 = sst [smem:[#allocation16_spill]] %s3165_s26  ;;  %p2757_p4 = por %p396_p2, %p395_p1 }
   0xe   : > { %s380_s29 = ssub.s32 %s2613_s22, %s3165_s26  ;;  %p2152_p6 = scmp.ge.s32.totalorder %s2617_s23, 1 }
   0xf   : > { %p383_p7 = scmp.eq.s32.totalorder %s380_s29, 0  ;;  %p2764_p8 = por %p402_p5, %p401_p3 }
  0x10   : > { %p409_p9 = scmp.lt.s32.totalorder %s2617_s23, 3  ;;  %p2776_p11 = scmp.eq.s32.totalorder %s2150_s24, 0 }
  0x11   : > { %s3148_s30 = scalar_select %p2764_p8, 1, 0 }
  0x12   : > { %s2770_s16 = scalar_select %p383_p7, %s2605_s20, %s385_s27  }
  0x13   : > { %3149 = sst [smem:[#allocation17_spill]] %s3148_s30  ;;  %p2772_p10 = pnand %p2152_p6, %p409_p9 }
  0x14   : > { %3150 = sst [smem:[#allocation18_spill]] %s2770_s16  ;;  %s2619_s25 = smov [#allocation5]  }
  0x15   : > { %p2335_p12 = pneg %p2772_p10  ;;  %s443_s29 = sshll.u32 %s2619_s25, 4  ;;  %s444_s29 = int_to_ptr.vmem [resolvable:$true] %s443_s29 }
  0x16   : > { %s2620_s27 = smov [#allocation2]   ;;  %s2466_s24 = scalar_lea.vmem %s444_s29, 256 }
  0x17   : > { %p2784_p13 = pnand %p2776_p11, %p2335_p12  ;;  %s427_s22 = sshll.u32 %s2620_s27, 4  ;;  %s428_s22 = int_to_ptr.vmem [resolvable:$true] %s427_s22 }
  0x18   : > { %p2467_p1 = scmp.ne.s32.totalorder %s444_s29, %s2466_s24  ;;  %p2474_p5 = scmp.lt.s32.totalorder %s444_s29, %s444_s29 }
  0x19   : > { %p2457_p0 = pneg %p2784_p13  ;;  %p2475_p6 = scmp.lt.s32.totalorder %s2466_s24, %s2466_s24 }
  0x1b   : > { %p2469_p2 = pnand %p2467_p1, %p2457_p0  ;;  %p2476_p7 = por %p2475_p6, %p2474_p5 }
  0x1d   : > { %p2470_p3 = pneg %p2469_p2 }
  0x1f   : > { %p2477_p9 = pnand %p2476_p7, %p2470_p3 }
  0x21   : > { %2480 = shalt.err (!%p2477_p9)
}
  0x22   : > { %s2621_s25 = smov 64   ;;  %s2622_s16 = smov 4  }
  0x23   : > { %2341 = dma.hbm_to_vmem [thread:$0]  (!%p2784_p13), %s3126_s7, 256, %s444_s29, [#allocation6], %s2621_s25, %s2621_s25, %s2622_s16  }
  0x24   : > { %s2492_s30 = scalar_lea.vmem %s428_s22, 256  ;;  %p2500_p8 = scmp.lt.s32.totalorder %s428_s22, %s428_s22 }
  0x25   : > { %p2493_p12 = scmp.ne.s32.totalorder %s428_s22, %s2492_s30  ;;  %p2501_p5 = scmp.lt.s32.totalorder %s2492_s30, %s2492_s30 }
  0x27   : > { %p2495_p1 = pnand %p2493_p12, %p2457_p0  ;;  %p2502_p3 = por %p2501_p5, %p2500_p8 }
  0x29   : > { %p2496_p2 = pneg %p2495_p1 }
  0x2b   : > { %p2503_p6 = pnand %p2502_p3, %p2496_p2 }
  0x2d   : > { %2506 = shalt.err (!%p2503_p6)
}
  0x2e   : > { %2338 = dma.hbm_to_vmem [thread:$0]  (!%p2784_p13), %s3124_s5, 256, %s428_s22, [#allocation3], %s2621_s25, %s2621_s25, %s2622_s16  }
  0x2f   : > { %s2623_s20 = smov [#allocation7]  }
  0x30   : > { %s465_s29 = sshll.u32 %s2623_s20, 4  ;;  %s466_s29 = int_to_ptr.vmem [resolvable:$true] %s465_s29 }
  0x31   : > { %s2518_s27 = scalar_lea.vmem %s466_s29, 256  ;;  %p2526_p1 = scmp.lt.s32.totalorder %s466_s29, %s466_s29 }
  0x32   : > { %p2519_p7 = scmp.ne.s32.totalorder %s466_s29, %s2518_s27  ;;  %p2527_p8 = scmp.lt.s32.totalorder %s2518_s27, %s2518_s27 }
  0x34   : > { %p2521_p9 = pnand %p2519_p7, %p2457_p0  ;;  %p2528_p2 = por %p2527_p8, %p2526_p1 }
  0x36   : > { %p2522_p12 = pneg %p2521_p9 }
  0x38   : > { %p2529_p5 = pnand %p2528_p2, %p2522_p12 }
  0x3a   : > { %2532 = shalt.err (!%p2529_p5)
}
  0x3b   : > { %2344 = dma.hbm_to_vmem [thread:$0]  (!%p2784_p13), %s3130_s11, 256, %s466_s29, [#allocation6], %s2621_s25, %s2621_s25, %s2622_s16  }
  0x3c   : > { %517 = sbr.rel (%p2772_p10) target bundleno = 2696 (0xa88), region = 80 }
  0x41   : > { %2584 = dma.done.wait (%p2776_p11), [#allocation3], 256  }
  0x42   : > { %2586 = vsyncadd (%p2776_p11), [#allocation3], 4294967040 }
  0x43   : > { %2588 = dma.done.wait (%p2776_p11), [#allocation6], 512  }
  0x44   : > { %2590 = vsyncadd (%p2776_p11), [#allocation6], 4294966784  ;;  %p586_p0 = scmp.lt.s32.totalorder %s2609_s21, 1  ;;  %vm612_vm0 = vcmask 261120   ;;  %v2421_v7 = vld [vmem:[#allocation2 + $0x8] sm:$0xff]   ;;  %v2624_v8 = vmov 0.0   ;;  %v730_v36 = vlaneseq }
  0x45   : > { %2237 = vmatprep.subr.bf16.mxu0 %v2624_v8  ;;  %vm2625_vm1 = vmmov 0   ;;  %v2422_v9 = vld [vmem:[#allocation2] sm:$0xff]   ;;  %2245 = vmatprep.subr.bf16.mxu1 %v2624_v8  ;;  %s2626_s23 = smov 104   ;;  %s2628_s16 = smov 112   ;;  %v2630_v34 = vmov 1983009808  }
  0x46   : > { %s587_s22 = scalar_select %p586_p0, %s2609_s21, 1  ;;  %2241 = vmatprep.mubr.msk.bf16.mxu0 %vm2625_vm1, %v2624_v8  ;;  %2238 = vmatpush3.bf16.msra.mxu0 %v2421_v7  ;;  %v2165_v18 = vld [vmem:[%s3122_s3] ss:$0 sm:$0xff]  ;;  %v728_v35 = vunpack.c.l.s4 %v2630_v34  ;;  %v731_v38 = vshrl.u32 %v730_v36, 7  ;;  %v2631_v40 = vmov 1934713408  }
  0x47   : > { %2239 = vmatprep.subr.bf16.mxu0 %v2624_v8  ;;  %2247 = vmatprep.mubr.msk.bf16.mxu1 %vm2625_vm1, %v2624_v8  ;;  %v2166_v21 = vld [vmem:[%s3123_s4] ss:$0 sm:$0xff]  ;;  %s2629_s17 = smov 96   ;;  %v760_v41 = vunpack.c.l.s4 %v2631_v40  ;;  %vm1169_vm4 = vcmask 64512   ;;  %s2632_s20 = smov 64   ;;  %vm1413_vm6 = vcmask 1043456  }
  0x48   : > { %s2826_s26 = sshll.u32 %s587_s22, 3  ;;  %v2167_v25 = vld [vmem:[%s3125_s6] ss:$0 sm:$0xff]  ;;  %s2627_s22 = smov 120   ;;  %v729_v37 = vunpack.c.0.s8 %v728_v35  ;;  %vm1744_vm7 = vcmask 130048   ;;  %vm1746_vm8 = vcmask 195584  }
  0x49   : > { %s596_s25 = scalar_lea.vmem %s3120_s1, %s2826_s26  ;;  %v761_v48 = vunpack.c.0.s8 %v760_v41  ;;  %s603_s24 = scalar_lea.vmem %s3121_s2, %s2826_s26  ;;  %vm1960_vm11 = vcmask 523264  }
  0x4a   : > { %v606_v0 = vld [vmem:[%s596_s25] sm:$0xff]  ;;  %2240 = vmatpush3.bf16.msra.mxu0 %v2422_v9  ;;  %v2873_v44 = vsub.s32 %v729_v37, %v731_v38  ;;  %s2633_s29 = smov 16   ;;  %s2634_s27 = smov 8  }
  0x4b   : > { %v613_v1 = vsel %vm612_vm0, %v606_v0, 0.0  ;;  %2251 = vmatprep.subr.bf16.mxu0 %v2624_v8  ;;  %v2883_v54 = vsub.s32 %v761_v48, %v731_v38  ;;  %s2635_s30 = smov 24   ;;  %s2636_s18 = smov [#allocation8]  }
  0x4c   : > { %614 = vadd.xlane.f32.xlu0 %v613_v1 }
  0xd5   : > { %v615_v2 = vpop.xlane.xlu0 %614 }
  0xd6   : > { %v617_v3 = vmul.f32 0.03125, %v615_v2 }
  0xd8   : > { %v618_v4 = vsub.f32 %v606_v0, %v617_v3 }
  0xda   : > { %v619_v5 = vmul.f32 %v618_v4, %v618_v4  ;;  %v639_v19 = vmul.f32 %v2165_v18, %v618_v4 }
  0xdc   : > { %v620_v6 = vsel %vm612_vm0, %v619_v5, 0.0 }
  0xdd   : > { %621 = vadd.xlane.f32.xlu0 %v620_v6 }
 0x166   : > { %v622_v10 = vpop.xlane.xlu0 %621 }
 0x167   : > { %v623_v11 = vmul.f32 0.032258064, %v622_v10 }
 0x169   : > { %2431 = vrsqrt.f32 %v623_v11  ;;  %vm626_vm2 = vcmp.eq.f32.partialorder %v623_v11, inf  ;;  %v629_v14 = vand.u32 2147483648, %v623_v11  ;;  %vm628_vm3 = vcmp.eq.f32.partialorder %v623_v11, 0.0 }
 0x176   : > { %v2432_v12 = vpop.eup %2431 }
 0x177   : > { %v625_v13 = vmul.f32 %v2432_v12, %v623_v11 }
 0x179   : > { %v627_v15 = vsel %vm626_vm2, %v623_v11, %v625_v13 }
 0x17a   : > { %v630_v16 = vsel %vm628_vm3, %v629_v14, %v627_v15 }
 0x17b   : > { %v631_v17 = vadd.f32 1e-06, %v630_v16 }
 0x17d   : > { %2433 = vrcp.f32 %v631_v17 }
 0x18a   : > { %v2434_v20 = vpop.eup %2433 }
 0x18b   : > { %v640_v22 = vmul.f32 %v2434_v20, %v639_v19 }
 0x18d   : > { %v647_v23 = vadd.f32 %v2166_v21, %v640_v22 }
 0x18f   : > { %v648_v24 = vpack.c.bf16 %v647_v23, %v647_v23 }
 0x191   : > { %2242 = vmatmul.mubr.msk.bf16.vlgmr.msra.gmra.mxu0 %vm612_vm0, %v648_v24 }
 0x192   : > { %2253 = vmatprep.mubr.msk.bf16.mxu0 %vm2625_vm1, %v2624_v8 }
 0x251   : > { %v709_v26 = vpop.f32.mrf.mxu0 }
 0x252   : > { %v2854_v27 = vadd.f32 %v2167_v25, %v709_v26 }
 0x253   : > { %v2243_v28 = vpop.f32.mrf.mxu0 }
 0x254   : > { %722 = vrot.lane.b32.xlu0 %v2854_v27, %s2626_s23  ;;  %716 = vrot.lane.b32.xlu1 %v2854_v27, %s2627_s22 }
 0x255   : > { %v712_v29 = vpop.f32.mrf.mxu0 }
 0x257   : > { %v2244_v30 = vpop.f32.mrf.mxu0 }
 0x258   : > { %719 = vrot.lane.b32.xlu1 %v2854_v27, %s2628_s16  ;;  %s592_s16 = scalar_lea.vmem %s3119_s0, %s2826_s26 }
 0x25c   : > { %865 = vrot.lane.b32.xlu1 %v2854_v27, %s2629_s17 }
 0x2c6   : > { %v2860_v31 = vpop.permute.xlu1 %716  ;;  %v2866_v33 = vpop.permute.xlu0 %722 }
 0x2c7   : > { %867 = vrot.lane.b32.xlu1 %v2860_v31, %s2629_s17  ;;  %v741_v45 = vcombine.low %v2860_v31, %v2866_v33  ;;  %v742_v46 = vcombine.high %v2860_v31, %v2866_v33 }
 0x2c9   : > { %v749_v51 = vrot.slane %v741_v45, %v2873_v44  ;;  %v756_v52 = vrot.slane %v742_v46, %v2873_v44 }
 0x2ca   : > { %v2863_v32 = vpop.permute.xlu1 %719 }
 0x2cb   : > { %869 = vrot.lane.b32.xlu1 %v2863_v32, %s2629_s17  ;;  %v725_v42 = vcombine.low %v2854_v27, %v2863_v32  ;;  %v726_v43 = vcombine.high %v2854_v27, %v2863_v32 }
 0x2cd   : > { %v733_v49 = vrot.slane %v725_v42, %v2873_v44  ;;  %v740_v50 = vrot.slane %v726_v43, %v2873_v44 }
 0x2ce   : > { %v866_v39 = vpop.permute.xlu1 %865 }
 0x2cf   : > { %871 = vrot.lane.b32.xlu1 %v2866_v33, %s2629_s17  ;;  %v757_v55 = vcombine.low %v733_v49, %v749_v51  ;;  %v758_v56 = vcombine.high %v733_v49, %v749_v51  ;;  %v773_v57 = vcombine.low %v740_v50, %v756_v52  ;;  %v774_v58 = vcombine.high %v740_v50, %v756_v52 }
 0x2d1   : > { %v765_v0 = vrot.slane %v757_v55, %v2883_v54  ;;  %v772_v1 = vrot.slane %v758_v56, %v2883_v54  ;;  %v781_v2 = vrot.slane %v773_v57, %v2883_v54  ;;  %v788_v3 = vrot.slane %v774_v58, %v2883_v54 }
 0x2d3   : > { %v793_v13 = vcombine.low %v765_v0, %v772_v1  ;;  %v2171_v14 = vcombine.high %v765_v0, %v772_v1  ;;  %v809_v15 = vcombine.low %v781_v2, %v788_v3  ;;  %v2172_v16 = vcombine.high %v781_v2, %v788_v3 }
 0x2d5   : > { %v800_v25 = vrot.slane %v793_v13, %v2873_v44  ;;  %v808_v26 = vrot.slane %v2171_v14, %v2873_v44  ;;  %v816_v28 = vrot.slane %v809_v15, %v2873_v44  ;;  %v824_v29 = vrot.slane %v2172_v16, %v2873_v44 }
 0x2d7   : > { %v825_v43 = vcombine.low %v800_v25, %v808_v26  ;;  %v841_v45 = vcombine.low %v816_v28, %v824_v29 }
 0x2d9   : > { %v833_v52 = vrot.slane %v825_v43, %v2883_v54 }
 0x339   : > { %v868_v47 = vpop.permute.xlu1 %867 }
 0x33d   : > { %v870_v53 = vpop.permute.xlu1 %869 }
 0x33e   : > { %v877_v59 = vcombine.low %v866_v39, %v870_v53  ;;  %v878_v60 = vcombine.high %v866_v39, %v870_v53  ;;  %v849_v53 = vrot.slane %v841_v45, %v2883_v54 }
 0x340   : > { %v885_v4 = vrot.slane %v877_v59, %v2873_v44  ;;  %v892_v5 = vrot.slane %v878_v60, %v2873_v44  ;;  %v826_v59 = vcombine.high %v800_v25, %v808_v26  ;;  %v842_v60 = vcombine.high %v816_v28, %v824_v29 }
 0x341   : > { %v872_v61 = vpop.permute.xlu1 %871 }
 0x342   : > { %v893_v62 = vcombine.low %v868_v47, %v872_v61  ;;  %v894_v63 = vcombine.high %v868_v47, %v872_v61  ;;  %v857_v61 = vcombine.low %v833_v52, %v849_v53  ;;  %v840_v3 = vrot.slane %v826_v59, %v2883_v54 }
 0x344   : > { %v901_v6 = vrot.slane %v893_v62, %v2873_v44  ;;  %v908_v7 = vrot.slane %v894_v63, %v2873_v44  ;;  %v858_v62 = vcombine.high %v833_v52, %v849_v53  ;;  %v861_v1 = vpack.c.bf16 %v857_v61, %v857_v61 }
 0x346   : > { %v909_v9 = vcombine.low %v885_v4, %v901_v6  ;;  %v910_v10 = vcombine.high %v885_v4, %v901_v6  ;;  %v925_v11 = vcombine.low %v892_v5, %v908_v7  ;;  %v926_v12 = vcombine.high %v892_v5, %v908_v7 }
 0x347   : > { %v862_v2 = vpack.c.bf16 %v858_v62, %v858_v62  ;;  %v856_v4 = vrot.slane %v842_v60, %v2883_v54 }
 0x348   : > { %v917_v17 = vrot.slane %v909_v9, %v2883_v54  ;;  %v924_v18 = vrot.slane %v910_v10, %v2883_v54  ;;  %v933_v19 = vrot.slane %v925_v11, %v2883_v54  ;;  %v940_v20 = vrot.slane %v926_v12, %v2883_v54  ;;  %v607_v12 = vld [vmem:[%s603_s24] sm:$0xff]  ;;  %s583_s24 = sand.u32 1, %s2601_s19  }
 0x349   : > { %v859_v7 = vcombine.low %v840_v3, %v856_v4  ;;  %v860_v9 = vcombine.high %v840_v3, %v856_v4  ;;  %vm608_vm5 = vcmp.lt.f32.partialorder %v607_v12, 0.5 }
 0x34a   : > { %v945_v21 = vcombine.low %v917_v17, %v924_v18  ;;  %v2173_v22 = vcombine.high %v917_v17, %v924_v18  ;;  %v961_v23 = vcombine.low %v933_v19, %v940_v20  ;;  %v2174_v24 = vcombine.high %v933_v19, %v940_v20 }
 0x34b   : > { %v863_v10 = vpack.c.bf16 %v859_v7, %v859_v7  ;;  %v864_v11 = vpack.c.bf16 %v860_v9, %v860_v9  ;;  %v609_v15 = vsel %vm608_vm5, -1e+09, %v2624_v8 }
 0x34c   : > { %v952_v30 = vrot.slane %v945_v21, %v2873_v44  ;;  %v960_v34 = vrot.slane %v2173_v22, %v2873_v44  ;;  %v968_v35 = vrot.slane %v961_v23, %v2873_v44  ;;  %v976_v36 = vrot.slane %v2174_v24, %v2873_v44 }
 0x34e   : > { %v977_v37 = vcombine.low %v952_v30, %v960_v34  ;;  %v993_v38 = vcombine.low %v968_v35, %v976_v36  ;;  %v978_v39 = vcombine.high %v952_v30, %v960_v34  ;;  %v994_v40 = vcombine.high %v968_v35, %v976_v36 }
 0x350   : > { %v985_v41 = vrot.slane %v977_v37, %v2883_v54  ;;  %v1001_v42 = vrot.slane %v993_v38, %v2883_v54  ;;  %v992_v48 = vrot.slane %v978_v39, %v2883_v54  ;;  %v1008_v49 = vrot.slane %v994_v40, %v2883_v54 }
 0x352   : > { %v1009_v46 = vcombine.low %v985_v41, %v1001_v42  ;;  %v1010_v47 = vcombine.high %v985_v41, %v1001_v42  ;;  %v1011_v57 = vcombine.low %v992_v48, %v1008_v49  ;;  %v1012_v58 = vcombine.high %v992_v48, %v1008_v49 }
 0x354   : > { %v1013_v50 = vpack.c.bf16 %v1009_v46, %v1009_v46  ;;  %v1014_v51 = vpack.c.bf16 %v1010_v47, %v1010_v47  ;;  %v1015_v63 = vpack.c.bf16 %v1011_v57, %v1011_v57  ;;  %v1016_v0 = vpack.c.bf16 %v1012_v58, %v1012_v58 }
 0x356   : > { %v1174_v55 = vsel %vm1169_vm4, %v1013_v50, 0  ;;  %v1220_v56 = vsel %vm1169_vm4, %v1014_v51, 0  ;;  %v1266_v5 = vsel %vm1169_vm4, %v1015_v63, 0  ;;  %v1312_v6 = vsel %vm1169_vm4, %v1016_v0, 0 }
 0x357   : > { %2246 = vmatpush3.bf16.xpose.msra.mxu1 %v1174_v55  ;;  %2252 = vmatpush3.bf16.xpose.msra.mxu0 %v1220_v56 }
 0x358   : > { %2257 = vmatprep.subr.bf16.mxu1 %v2624_v8  ;;  %2263 = vmatprep.subr.bf16.mxu0 %v2624_v8 }
 0x35e   : > { %2248 = vmatmul.mubr.msk.bf16.vlgmr.msra.gmra.mxu1 %vm1169_vm4, %v861_v1  ;;  %2254 = vmatmul.mubr.msk.bf16.vlgmr.msra.gmra.mxu0 %vm1169_vm4, %v862_v2 }
 0x35f   : > { %2258 = vmatpush3.bf16.xpose.msra.mxu1 %v1266_v5  ;;  %2264 = vmatpush3.bf16.xpose.msra.mxu0 %v1312_v6 }
 0x360   : > { %2259 = vmatprep.mubr.msk.bf16.mxu1 %vm2625_vm1, %v2624_v8  ;;  %2265 = vmatprep.mubr.msk.bf16.mxu0 %vm2625_vm1, %v2624_v8 }
 0x361   : > { %2269 = vmatprep.subr.bf16.mxu1 %v2624_v8  ;;  %2275 = vmatprep.subr.bf16.mxu0 %v2624_v8 }
 0x366   : > { %2260 = vmatmul.mubr.msk.bf16.vlgmr.msra.gmra.mxu1 %vm1169_vm4, %v863_v10  ;;  %2266 = vmatmul.mubr.msk.bf16.vlgmr.msra.gmra.mxu0 %vm1169_vm4, %v864_v11 }
 0x367   : > { %2271 = vmatprep.mubr.msk.bf16.mxu1 %vm2625_vm1, %v2624_v8  ;;  %2277 = vmatprep.mubr.msk.bf16.mxu0 %vm2625_vm1, %v2624_v8 }
 0x41e   : > { %v1210_v13 = vpop.f32.mrf.mxu1  ;;  %v1256_v14 = vpop.f32.mrf.mxu0 }
 0x41f   : > { %v1354_v16 = vmul.f32 0.35355338, %v1210_v13  ;;  %v1355_v17 = vmul.f32 0.35355338, %v1256_v14 }
 0x420   : > { %v2249_v18 = vpop.f32.mrf.mxu1  ;;  %v2255_v19 = vpop.f32.mrf.mxu0 }
 0x421   : > { %v1358_v20 = vadd.f32 %v1354_v16, %v609_v15  ;;  %v1359_v21 = vadd.f32 %v1355_v17, %v609_v15 }
 0x422   : > { %v1213_v22 = vpop.f32.mrf.mxu1  ;;  %v1259_v23 = vpop.f32.mrf.mxu0 }
 0x423   : > { %v1362_v24 = vsel %vm1169_vm4, %v1358_v20, -inf  ;;  %v1365_v25 = vsel %vm1169_vm4, %v1359_v21, -inf }
 0x424   : > { %1363 = vmax.xlane.f32.xlu1 %v1362_v24  ;;  %v2250_v26 = vpop.f32.mrf.mxu1  ;;  %1366 = vmax.xlane.f32.xlu0 %v1365_v25  ;;  %v2256_v28 = vpop.f32.mrf.mxu0 }
 0x426   : > { %v1302_v29 = vpop.f32.mrf.mxu1  ;;  %v1348_v30 = vpop.f32.mrf.mxu0 }
 0x427   : > { %v1356_v34 = vmul.f32 0.35355338, %v1302_v29  ;;  %v1357_v35 = vmul.f32 0.35355338, %v1348_v30 }
 0x428   : > { %v2261_v36 = vpop.f32.mrf.mxu1  ;;  %v2267_v37 = vpop.f32.mrf.mxu0 }
 0x429   : > { %v1360_v38 = vadd.f32 %v1356_v34, %v609_v15  ;;  %v1361_v39 = vadd.f32 %v1357_v35, %v609_v15 }
 0x42a   : > { %v1305_v40 = vpop.f32.mrf.mxu1  ;;  %v1351_v41 = vpop.f32.mrf.mxu0 }
 0x42b   : > { %v1368_v42 = vsel %vm1169_vm4, %v1360_v38, -inf  ;;  %v1371_v43 = vsel %vm1169_vm4, %v1361_v39, -inf }
 0x42c   : > { %1369 = vmax.xlane.f32.xlu1 %v1368_v42  ;;  %v2262_v45 = vpop.f32.mrf.mxu1  ;;  %1372 = vmax.xlane.f32.xlu0 %v1371_v43  ;;  %v2268_v46 = vpop.f32.mrf.mxu0 }
 0x43d   : > { %1017 = vrot.lane.b32.xlu1 %v2854_v27, %s2632_s20 }
 0x4ad   : > { %v1364_v47 = vpop.xlane.xlu1 %1363  ;;  %v1367_v48 = vpop.xlane.xlu0 %1366 }
 0x4ae   : > { %v1374_v49 = vsub.f32 %v1358_v20, %v1364_v47  ;;  %v1375_v50 = vsub.f32 %v1359_v21, %v1367_v48 }
 0x4b0   : > { %v1378_v51 = vmul.f32 1.442695, %v1374_v49  ;;  %v1380_v52 = vmul.f32 1.442695, %v1375_v50 }
 0x4b2   : > { %2435 = vpow2.f32 %v1378_v51 }
 0x4b3   : > { %2437 = vpow2.f32 %v1380_v52 }
 0x4b5   : > { %v1370_v27 = vpop.xlane.xlu1 %1369  ;;  %v1373_v59 = vpop.xlane.xlu0 %1372 }
 0x4b6   : > { %v1376_v58 = vsub.f32 %v1360_v38, %v1370_v27  ;;  %v1377_v60 = vsub.f32 %v1361_v39, %v1373_v59 }
 0x4b8   : > { %v1382_v61 = vmul.f32 1.442695, %v1376_v58  ;;  %v1384_v62 = vmul.f32 1.442695, %v1377_v60 }
 0x4ba   : > { %2439 = vpow2.f32 %v1382_v61 }
 0x4bb   : > { %2441 = vpow2.f32 %v1384_v62 }
 0x4bf   : > { %v2943_v53 = vpop.eup %2435 }
 0x4c0   : > { %v2945_v55 = vpop.eup %2437  ;;  %v1386_v56 = vsel %vm1169_vm4, %v2943_v53, 0.0 }
 0x4c1   : > { %1387 = vadd.xlane.f32.xlu1 %v1386_v56  ;;  %v1389_v57 = vsel %vm1169_vm4, %v2945_v55, 0.0 }
 0x4c2   : > { %1390 = vadd.xlane.f32.xlu0 %v1389_v57 }
 0x4c7   : > { %v2954_v63 = vpop.eup %2439 }
 0x4c8   : > { %v2956_v0 = vpop.eup %2441  ;;  %v1392_v1 = vsel %vm1169_vm4, %v2954_v63, 0.0 }
 0x4d2   : > { %1021 = vrot.lane.b32.xlu1 %v2863_v32, %s2632_s20  ;;  %v1395_v32 = vsel %vm1169_vm4, %v2956_v0, 0.0 }
 0x4d6   : > { %1023 = vrot.lane.b32.xlu1 %v2866_v33, %s2632_s20 }
 0x4d8   : > { %1019 = vrot.lane.b32.xlu0 %v2860_v31, %s2632_s20  ;;  %v1018_v31 = vpop.permute.xlu1 %1017  ;;  %s2161_s20 = sshll.u32 %s583_s24, 3 }
 0x4d9   : > { %s585_s23 = scalar_lea.vmem [#allocation8], %s2161_s20  ;;  %s2537_s20 = sshll.u32 %s2636_s18, 4  ;;  %s2538_s20 = int_to_ptr.vmem [resolvable:$false] %s2537_s20 }
 0x4da   : > { %s2021_s22 = sshll.u32 %s585_s23, 4  ;;  %s3074_s22 = int_to_ptr.vmem [resolvable:$true] %s2021_s22 }
 0x4db   : > { %s2533_s26 = scalar_lea.vmem %s3074_s22, 128  ;;  %p2540_p3 = scmp.lt.s32.totalorder %s3074_s22, %s2538_s20 }
 0x4dc   : > { %p2534_p10 = scmp.ne.s32.totalorder %s3074_s22, %s2533_s26 }
 0x4de   : > { %p2535_p11 = pnand %p2534_p10, %p2757_p4 }
 0x4e0   : > { %p2536_p13 = pneg %p2535_p11 }
 0x4f7   : > { %1393 = vadd.xlane.f32.xlu0 %v1392_v1 }
 0x4fa   : > { %1396 = vadd.xlane.f32.xlu1 %v1395_v32 }
 0x54a   : > { %v1388_v33 = vpop.xlane.xlu1 %1387 }
 0x54b   : > { %v1391_v2 = vpop.xlane.xlu0 %1390  ;;  %2443 = vrcp.f32 %v1388_v33 }
 0x54c   : > { %2445 = vrcp.f32 %v1391_v2 }
 0x54e   : > { %v1022_v3 = vpop.permute.xlu1 %1021 }
 0x54f   : > { %v1029_v4 = vcombine.low %v1018_v31, %v1022_v3  ;;  %v1030_v5 = vcombine.high %v1018_v31, %v1022_v3  ;;  %v1020_v6 = vpop.permute.xlu0 %1019 }
 0x551   : > { %v1037_v11 = vrot.slane %v1029_v4, %v2873_v44  ;;  %v1044_v12 = vrot.slane %v1030_v5, %v2873_v44  ;;  %v2423_v5 = vld [vmem:[#allocation5 + $0x8] sm:$0xff]  }
 0x552   : > { %v1024_v7 = vpop.permute.xlu1 %1023 }
 0x553   : > { %v1045_v9 = vcombine.low %v1020_v6, %v1024_v7  ;;  %v1046_v10 = vcombine.high %v1020_v6, %v1024_v7 }
 0x555   : > { %v1053_v13 = vrot.slane %v1045_v9, %v2873_v44  ;;  %v1060_v14 = vrot.slane %v1046_v10, %v2873_v44 }
 0x557   : > { %v1061_v15 = vcombine.low %v1037_v11, %v1053_v13  ;;  %v1062_v16 = vcombine.high %v1037_v11, %v1053_v13  ;;  %v1077_v17 = vcombine.low %v1044_v12, %v1060_v14  ;;  %v1078_v18 = vcombine.high %v1044_v12, %v1060_v14 }
 0x558   : > { %v2444_v39 = vpop.eup %2443 }
 0x559   : > { %v1069_v19 = vrot.slane %v1061_v15, %v2883_v54  ;;  %v1076_v20 = vrot.slane %v1062_v16, %v2883_v54  ;;  %v1085_v21 = vrot.slane %v1077_v17, %v2883_v54  ;;  %v1092_v22 = vrot.slane %v1078_v18, %v2883_v54  ;;  %v2446_v40 = vpop.eup %2445 }
 0x55a   : > { %v1402_v52 = vmul.f32 %v2444_v39, %v2943_v53  ;;  %v1403_v56 = vmul.f32 %v2446_v40, %v2945_v55 }
 0x55b   : > { %v1097_v23 = vcombine.low %v1069_v19, %v1076_v20  ;;  %v2175_v24 = vcombine.high %v1069_v19, %v1076_v20  ;;  %v1113_v25 = vcombine.low %v1085_v21, %v1092_v22  ;;  %v2176_v26 = vcombine.high %v1085_v21, %v1092_v22 }
 0x55c   : > { %v1406_v60 = vpack.c.bf16 %v1402_v52, %v1402_v52  ;;  %v1407_v61 = vpack.c.bf16 %v1403_v56, %v1403_v56 }
 0x55d   : > { %v1104_v28 = vrot.slane %v1097_v23, %v2873_v44  ;;  %v1112_v29 = vrot.slane %v2175_v24, %v2873_v44  ;;  %v1120_v30 = vrot.slane %v1113_v25, %v2873_v44  ;;  %v1128_v34 = vrot.slane %v2176_v26, %v2873_v44 }
 0x55f   : > { %v1129_v35 = vcombine.low %v1104_v28, %v1112_v29  ;;  %v1145_v36 = vcombine.low %v1120_v30, %v1128_v34  ;;  %v1130_v37 = vcombine.high %v1104_v28, %v1112_v29  ;;  %v1146_v38 = vcombine.high %v1120_v30, %v1128_v34 }
 0x561   : > { %v1137_v41 = vrot.slane %v1129_v35, %v2883_v54  ;;  %v1153_v42 = vrot.slane %v1145_v36, %v2883_v54  ;;  %v1144_v43 = vrot.slane %v1130_v37, %v2883_v54  ;;  %v1160_v45 = vrot.slane %v1146_v38, %v2883_v54  ;;  %v2424_v37 = vld [vmem:[#allocation5] sm:$0xff]  }
 0x563   : > { %v1161_v46 = vcombine.low %v1137_v41, %v1153_v42  ;;  %v1162_v47 = vcombine.high %v1137_v41, %v1153_v42  ;;  %v1163_v48 = vcombine.low %v1144_v43, %v1160_v45  ;;  %v1164_v49 = vcombine.high %v1144_v43, %v1160_v45 }
 0x565   : > { %v1165_v50 = vpack.c.bf16 %v1161_v46, %v1161_v46  ;;  %v1166_v51 = vpack.c.bf16 %v1162_v47, %v1162_v47  ;;  %v1167_v58 = vpack.c.bf16 %v1163_v48, %v1163_v48  ;;  %v1168_v59 = vpack.c.bf16 %v1164_v49, %v1164_v49 }
 0x567   : > { %v1415_v57 = vsel %vm1413_vm6, %v1165_v50, 0  ;;  %v1461_v27 = vsel %vm1413_vm6, %v1166_v51, 0  ;;  %v1507_v53 = vsel %vm1413_vm6, %v1167_v58, 0  ;;  %v1553_v55 = vsel %vm1413_vm6, %v1168_v59, 0 }
 0x568   : > { %2270 = vmatpush3.bf16.msra.mxu1 %v1415_v57  ;;  %2276 = vmatpush3.bf16.msra.mxu0 %v1461_v27 }
 0x569   : > { %2281 = vmatprep.subr.bf16.mxu1 %v2624_v8  ;;  %2287 = vmatprep.subr.bf16.mxu0 %v2624_v8 }
 0x56b   : > { %2272 = vmatmul.mubr.msk.bf16.vlgmr.msra.gmra.mxu1 %vm1169_vm4, %v1406_v60  ;;  %2278 = vmatmul.mubr.msk.bf16.vlgmr.msra.gmra.mxu0 %vm1169_vm4, %v1407_v61 }
 0x56c   : > { %2282 = vmatpush3.bf16.msra.mxu1 %v1507_v53  ;;  %2288 = vmatpush3.bf16.msra.mxu0 %v1553_v55 }
 0x56d   : > { %2283 = vmatprep.mubr.msk.bf16.mxu1 %vm2625_vm1, %v2624_v8  ;;  %2289 = vmatprep.mubr.msk.bf16.mxu0 %vm2625_vm1, %v2624_v8 }
 0x56e   : > { %2293 = vmatprep.subr.bf16.mxu1 %v2624_v8  ;;  %2301 = vmatprep.subr.bf16.mxu0 %v2624_v8 }
 0x580   : > { %v1394_v62 = vpop.xlane.xlu0 %1393 }
 0x581   : > { %2447 = vrcp.f32 %v1394_v62 }
 0x583   : > { %v1397_v1 = vpop.xlane.xlu1 %1396 }
 0x584   : > { %2449 = vrcp.f32 %v1397_v1 }
 0x58e   : > { %v2448_v32 = vpop.eup %2447 }
 0x58f   : > { %v1404_v31 = vmul.f32 %v2448_v32, %v2954_v63 }
 0x591   : > { %v2450_v33 = vpop.eup %2449  ;;  %v1408_v2 = vpack.c.bf16 %v1404_v31, %v1404_v31 }
 0x592   : > { %v1405_v3 = vmul.f32 %v2450_v33, %v2956_v0 }
 0x593   : > { %2284 = vmatmul.mubr.msk.bf16.vlgmr.msra.gmra.mxu1 %vm1169_vm4, %v1408_v2 }
 0x594   : > { %v1409_v4 = vpack.c.bf16 %v1405_v3, %v1405_v3  ;;  %2297 = vmatprep.mubr.msk.bf16.mxu1 %vm2625_vm1, %v2624_v8  ;;  %2294 = vmatpush3.bf16.msra.mxu1 %v2423_v5  ;;  %v2187_v3 = vld [vmem:[%s3127_s8] ss:$0 sm:$0xff] }
 0x595   : > { %2295 = vmatprep.subr.bf16.mxu1 %v2624_v8 }
 0x596   : > { %2290 = vmatmul.mubr.msk.bf16.vlgmr.msra.gmra.mxu0 %vm1169_vm4, %v1409_v4  ;;  %v605_v4 = vld [vmem:[%s592_s16] sm:$0xff] }
 0x597   : > { %2305 = vmatprep.mubr.msk.bf16.mxu0 %vm2625_vm1, %v2624_v8 }
 0x598   : > { %2296 = vmatpush3.bf16.msra.mxu1 %v2424_v37 }
 0x599   : > { %2309 = vmatprep.subr.bf16.mxu1 %v2624_v8 }
 0x62b   : > { %v1451_v63 = vpop.f32.mrf.mxu1  ;;  %v1497_v6 = vpop.f32.mrf.mxu0 }
 0x62d   : > { %v2273_v7 = vpop.f32.mrf.mxu1  ;;  %v2279_v9 = vpop.f32.mrf.mxu0 }
 0x62f   : > { %v1454_v0 = vpop.f32.mrf.mxu1  ;;  %v1500_v10 = vpop.f32.mrf.mxu0 }
 0x631   : > { %v2274_v11 = vpop.f32.mrf.mxu1  ;;  %v2280_v12 = vpop.f32.mrf.mxu0 }
 0x653   : > { %v1543_v13 = vpop.f32.mrf.mxu1 }
 0x654   : > { %v1595_v14 = vcombine.low %v1451_v63, %v1543_v13  ;;  %v1596_v15 = vcombine.high %v1451_v63, %v1543_v13 }
 0x655   : > { %v2285_v16 = vpop.f32.mrf.mxu1 }
 0x656   : > { %v1589_v17 = vpop.f32.mrf.mxu0  ;;  %v1603_v22 = vrot.slane %v1595_v14, %v2873_v44  ;;  %v1610_v23 = vrot.slane %v1596_v15, %v2873_v44  ;;  %v2425_v16 = vld [vmem:[#allocation7 + $0x8] sm:$0xff]  }
 0x657   : > { %v1546_v18 = vpop.f32.mrf.mxu1  ;;  %v1611_v19 = vcombine.low %v1497_v6, %v1589_v17  ;;  %v1612_v20 = vcombine.high %v1497_v6, %v1589_v17  ;;  %2302 = vmatpush3.bf16.msra.mxu0 %v2425_v16  ;;  %v2426_v17 = vld [vmem:[#allocation7] sm:$0xff]  }
 0x658   : > { %v2291_v21 = vpop.f32.mrf.mxu0  ;;  %2303 = vmatprep.subr.bf16.mxu0 %v2624_v8  ;;  %v2427_v18 = vld [vmem:[%s3132_s13 + $0x18] sm:$0xff]  }
 0x659   : > { %v1619_v24 = vrot.slane %v1611_v19, %v2873_v44  ;;  %v1626_v25 = vrot.slane %v1612_v20, %v2873_v44  ;;  %v2286_v26 = vpop.f32.mrf.mxu1  ;;  %v2428_v19 = vld [vmem:[%s3132_s13 + $0x10] sm:$0xff]  }
 0x65a   : > { %v1592_v28 = vpop.f32.mrf.mxu0 }
 0x65b   : > { %v1627_v29 = vcombine.low %v1603_v22, %v1619_v24  ;;  %v1628_v30 = vcombine.high %v1603_v22, %v1619_v24  ;;  %v1643_v34 = vcombine.low %v1610_v23, %v1626_v25  ;;  %v1644_v35 = vcombine.high %v1610_v23, %v1626_v25  ;;  %2304 = vmatpush3.bf16.msra.mxu0 %v2426_v17 }
 0x65c   : > { %v2292_v36 = vpop.f32.mrf.mxu0 }
 0x65d   : > { %v1635_v38 = vrot.slane %v1627_v29, %v2883_v54  ;;  %v1642_v39 = vrot.slane %v1628_v30, %v2883_v54  ;;  %v1651_v40 = vrot.slane %v1643_v34, %v2883_v54  ;;  %v1658_v41 = vrot.slane %v1644_v35, %v2883_v54  ;;  %v2191_v29 = vld [vmem:[%s3128_s9] ss:$0 sm:$0xff] }
 0x65e   : > { %v2192_v35 = vld [vmem:[%s3129_s10] ss:$0 sm:$0xff] }
 0x65f   : > { %v1663_v42 = vcombine.low %v1635_v38, %v1642_v39  ;;  %v2185_v43 = vcombine.high %v1635_v38, %v1642_v39  ;;  %v1679_v45 = vcombine.low %v1651_v40, %v1658_v41  ;;  %v2186_v46 = vcombine.high %v1651_v40, %v1658_v41  ;;  %v2429_v39 = vld [vmem:[%s3132_s13 + $0x8] sm:$0xff]   ;;  %v2430_v40 = vld [vmem:[%s3132_s13] sm:$0xff]  }
 0x660   : > { %v2193_v41 = vld [vmem:[%s3131_s12] ss:$0 sm:$0xff] }
 0x661   : > { %v1670_v47 = vrot.slane %v1663_v42, %v2873_v44  ;;  %v1678_v48 = vrot.slane %v2185_v43, %v2873_v44  ;;  %v1686_v49 = vrot.slane %v1679_v45, %v2873_v44  ;;  %v1694_v50 = vrot.slane %v2186_v46, %v2873_v44 }
 0x663   : > { %v1696_v51 = vcombine.high %v1670_v47, %v1678_v48  ;;  %v1712_v52 = vcombine.high %v1686_v49, %v1694_v50  ;;  %v1695_v56 = vcombine.low %v1670_v47, %v1678_v48  ;;  %v1711_v57 = vcombine.low %v1686_v49, %v1694_v50 }
 0x665   : > { %v1710_v27 = vrot.slane %v1696_v51, %v2883_v54  ;;  %v1726_v58 = vrot.slane %v1712_v52, %v2883_v54  ;;  %v1703_v59 = vrot.slane %v1695_v56, %v2883_v54  ;;  %v1719_v60 = vrot.slane %v1711_v57, %v2883_v54 }
 0x667   : > { %v1729_v61 = vcombine.low %v1710_v27, %v1726_v58  ;;  %v1728_v53 = vcombine.high %v1703_v59, %v1719_v60  ;;  %v1727_v55 = vcombine.low %v1703_v59, %v1719_v60  ;;  %v1730_v44 = vcombine.high %v1710_v27, %v1726_v58 }
 0x669   : > { %1736 = vrot.lane.b32.xlu1 %v1729_v61, %s2633_s29  ;;  %1732 = vrot.lane.b32.xlu0 %v1728_v53, %s2634_s27  ;;  %s2539_s29 = scalar_lea.vmem %s2538_s20, 256 }
 0x66a   : > { %p2541_p6 = scmp.lt.s32.totalorder %s2539_s29, %s2533_s26 }
 0x66c   : > { %p2542_p7 = por %p2541_p6, %p2540_p3 }
 0x66d   : > { %1740 = vrot.lane.b32.xlu0 %v1730_v44, %s2635_s30  ;;  %s2204_s30 = sshll.u32 %s2609_s21, 7  ;;  %s2007_s21 = scalar_lea.sflag [#allocation4], %s583_s24 }
 0x66e   : > { %s3072_s25 = scalar_lea.hbm %s3134_s15, %s2204_s30  ;;  %p2543_p9 = pnand %p2542_p7, %p2536_p13 }
 0x6db   : > { %v1733_v62 = vpop.permute.xlu0 %1732  ;;  %v1737_v1 = vpop.permute.xlu1 %1736 }
 0x6dc   : > { %v1743_v32 = vsel %vm1169_vm4, %v1727_v55, %v1733_v62 }
 0x6dd   : > { %v1745_v33 = vsel %vm1744_vm7, %v1743_v32, %v1737_v1 }
 0x6df   : > { %v1741_v31 = vpop.permute.xlu0 %1740 }
 0x6e0   : > { %v1747_v54 = vsel %vm1746_vm8, %v1745_v33, %v1741_v31 }
 0x6e1   : > { %v1748_v2 = vpack.c.bf16 %v1747_v54, %v1747_v54 }
 0x6e3   : > { %2298 = vmatmul.mubr.msk.bf16.vlgmr.msra.gmra.mxu1 %vm612_vm0, %v1748_v2 }
 0x6e4   : > { %2317 = vmatprep.mubr.msk.bf16.mxu1 %vm2625_vm1, %v2624_v8  ;;  %2310 = vmatpush3.bf16.msra.mxu1 %v2427_v18 }
 0x6e5   : > { %2311 = vmatprep.subr.bf16.mxu1 %v2624_v8 }
 0x6e8   : > { %2312 = vmatpush3.bf16.msra.mxu1 %v2428_v19 }
 0x6e9   : > { %2313 = vmatprep.subr.bf16.mxu1 %v2624_v8 }
 0x6ec   : > { %2314 = vmatpush3.bf16.msra.mxu1 %v2429_v39 }
 0x6ed   : > { %2315 = vmatprep.subr.bf16.mxu1 %v2624_v8  ;;  %v2197_v8 = vld [vmem:[%s3133_s14] ss:$0 sm:$0xff] }
 0x6f0   : > { %2316 = vmatpush3.bf16.msra.mxu1 %v2430_v40 }
 0x7a3   : > { %v1809_v5 = vpop.f32.mrf.mxu1 }
 0x7a4   : > { %v1810_v63 = vadd.f32 %v2187_v3, %v1809_v5 }
 0x7a5   : > { %v2299_v6 = vpop.f32.mrf.mxu1 }
 0x7a6   : > { %v3031_v7 = vadd.f32 %v1810_v63, %v605_v4 }
 0x7a7   : > { %v1812_v9 = vpop.f32.mrf.mxu1 }
 0x7a8   : > { %v1818_v0 = vsel %vm612_vm0, %v3031_v7, 0.0 }
 0x7a9   : > { %v2300_v10 = vpop.f32.mrf.mxu1  ;;  %1819 = vadd.xlane.f32.xlu1 %v1818_v0 }
 0x832   : > { %v1820_v11 = vpop.xlane.xlu1 %1819 }
 0x833   : > { %v1821_v12 = vmul.f32 0.03125, %v1820_v11 }
 0x835   : > { %v1822_v13 = vsub.f32 %v3031_v7, %v1821_v12 }
 0x837   : > { %v1823_v14 = vmul.f32 %v1822_v13, %v1822_v13  ;;  %v1843_v30 = vmul.f32 %v2191_v29, %v1822_v13 }
 0x839   : > { %v1824_v15 = vsel %vm612_vm0, %v1823_v14, 0.0 }
 0x83a   : > { %1825 = vadd.xlane.f32.xlu0 %v1824_v15 }
 0x8c3   : > { %v1826_v20 = vpop.xlane.xlu0 %1825 }
 0x8c4   : > { %v1827_v21 = vmul.f32 0.032258064, %v1826_v20 }
 0x8c6   : > { %2451 = vrsqrt.f32 %v1827_v21  ;;  %vm1830_vm9 = vcmp.eq.f32.partialorder %v1827_v21, inf  ;;  %v1833_v24 = vand.u32 2147483648, %v1827_v21  ;;  %vm1832_vm10 = vcmp.eq.f32.partialorder %v1827_v21, 0.0 }
 0x8d3   : > { %v2452_v22 = vpop.eup %2451 }
 0x8d4   : > { %v1829_v23 = vmul.f32 %v2452_v22, %v1827_v21 }
 0x8d6   : > { %v1831_v25 = vsel %vm1830_vm9, %v1827_v21, %v1829_v23 }
 0x8d7   : > { %v1834_v26 = vsel %vm1832_vm10, %v1833_v24, %v1831_v25 }
 0x8d8   : > { %v1835_v28 = vadd.f32 1e-06, %v1834_v26 }
 0x8da   : > { %2453 = vrcp.f32 %v1835_v28 }
 0x8e7   : > { %v2454_v34 = vpop.eup %2453 }
 0x8e8   : > { %v1844_v36 = vmul.f32 %v2454_v34, %v1843_v30 }
 0x8ea   : > { %v1851_v37 = vadd.f32 %v2192_v35, %v1844_v36 }
 0x8ec   : > { %v1852_v38 = vpack.c.bf16 %v1851_v37, %v1851_v37 }
 0x8ee   : > { %2306 = vmatmul.mubr.msk.bf16.vlgmr.msra.gmra.mxu0 %vm612_vm0, %v1852_v38 }
 0x9ae   : > { %v1913_v42 = vpop.f32.mrf.mxu0 }
 0x9af   : > { %v1914_v43 = vadd.f32 %v2193_v41, %v1913_v42 }
 0x9b0   : > { %v2307_v45 = vpop.f32.mrf.mxu0 }
 0x9b1   : > { %v1919_v46 = vmax.f32 %v1914_v43, 0.0 }
 0x9b2   : > { %v1916_v47 = vpop.f32.mrf.mxu0 }
 0x9b3   : > { %v1920_v48 = vpack.c.bf16 %v1919_v46, %v1919_v46 }
 0x9b4   : > { %v2308_v49 = vpop.f32.mrf.mxu0 }
 0x9b5   : > { %2318 = vmatmul.mubr.msk.bf16.vlgmr.msra.gmra.mxu1 %vm1960_vm11, %v1920_v48 }
 0xa75   : > { %v1998_v50 = vpop.f32.mrf.mxu1 }
 0xa76   : > { %v1999_v51 = vadd.f32 %v2197_v8, %v1998_v50 }
 0xa77   : > { %v2319_v52 = vpop.f32.mrf.mxu1 }
 0xa78   : > { %v2004_v56 = vadd.f32 %v1999_v51, %v3031_v7 }
 0xa79   : > { %v2001_v57 = vpop.f32.mrf.mxu1 }
 0xa7a   : > { %2005 = vst.msk [vmem:[%s585_s23] sm:$0xff] %vm612_vm0, %v2004_v56 }
 0xa7b   : > { %v2320_v27 = vpop.f32.mrf.mxu1 }
 0xa7c   : > { %2546 = shalt.err (!%p2543_p9)
}
 0xa7d   : > { %s2547_s27 = scalar_lea.hbm %s3072_s25, 128  ;;  %s2551_s23 = scalar_lea.hbm %s3134_s15, 256 }
 0xa7e   : > { %p2548_p12 = scmp.ne.s32.totalorder %s3072_s25, %s2547_s27  ;;  %p2552_p2 = scmp.lt.s32.totalorder %s3072_s25, %s3134_s15 }
 0xa7f   : > { %p2553_p5 = scmp.lt.s32.totalorder %s2551_s23, %s2547_s27 }
 0xa80   : > { %p2549_p1 = pnand %p2548_p12, %p2757_p4 }
 0xa81   : > { %p2554_p0 = por %p2553_p5, %p2552_p2 }
 0xa82   : > { %p2550_p8 = pneg %p2549_p1 }
 0xa84   : > { %p2555_p10 = pnand %p2554_p0, %p2550_p8 }
 0xa86   : > { %2558 = shalt.err (!%p2555_p10)
}
 0xa87   : > { %2333 = dma.vmem_to_hbm [thread:$0]  (%p2757_p4), %s3074_s22, 128, %s3072_s25, %s2007_s21  }
 0xa88 PF: > { %s3154_s26 = sld [smem:[#allocation15_spill]] }
 0xa89   : > { %s3155_s18 = sld [smem:[#allocation12_spill]] }
 0xa8a   : > { %s3156_s20 = sld [smem:[#allocation17_spill]] }
 0xa8e   : > { %p2355_p11 = scmp.ge.s32.totalorder %s3154_s26, 2 }
 0xa8f   : > { %s2033_s29 = sand.u32 1, %s3155_s18  }
 0xa90   : > { %p3157_p13 = scmp.ne.s32.totalorder %s3156_s20, 0  ;;  %s2034_s24 = scalar_lea.sflag [#allocation4], %s2033_s29 }
 0xa92   : > { %p2346_p3 = pnand %p2355_p11, %p3157_p13 }
 0xa94   : > { %p2347_p6 = pneg %p2346_p3 }
 0xa96   : > { %2592 = dma.done.wait (%p2347_p6), %s2034_s24, 128  }
 0xa97   : > { %2594 = vsyncadd (%p2347_p6), %s2034_s24, 4294967168  ;;  %s30_s23 = sadd.s32 1, %s3154_s26   ;;  %s3158_s28 = sld [smem:[#allocation13_spill]] }
 0xa98   : > { %p27_p7 = scmp.ge.s32.totalorder %s30_s23, 4   ;;  %s3159_s20 = sld [smem:[#allocation18_spill]] }
 0xa99   : > { %s3160_s21 = sld [smem:[#allocation14_spill]]  ;;  %s3162_s18 = smov %s2601_s19 }
 0xa9a   : > { %s3161_s22 = sld [smem:[#allocation16_spill]]  ;;  %29 = sbr.rel (!%p27_p7) target bundleno = 6 (0x6), region = 134 }
 0xa9d   : > { %s3163_s19 = smov %s3158_s28 }
 0xa9f   :  { %2039 = vsyncpa [#allocation3], 1 }
 0xaa0   :  { %2041 = vsyncpa [#allocation3 + $0x1], 1 }
 0xaa1   :  { %2042 = vsyncpa [#allocation6], 1 }
 0xaa2   :  { %2043 = vsyncpa [#allocation4], 1 }
 0xaa3   :  { %2045 = vsyncpa [#allocation4 + $0x1], 1 }

</bundles_post_ra>
